<compile_context>
chip_gen: v7x
topology: tpu7x:2x2x1
jax: 0.10.0
libtpu: 0.0.40
codegen_flags: <defaults>
</compile_context>

<pallas_src>
import functools

import jax
import jax.numpy as jnp
import numpy as np
from jax import lax
from jax.experimental import pallas as pl
from jax.experimental.pallas import tpu as pltpu

_EPS = 1e-5
_VMEM_LIMIT_BYTES = 32 * 1024 * 1024      # explicit scoped-VMEM limit (safe v5e/v6e/v7x)
_BLOCK_BUDGET_BYTES = 12 * 1024 * 1024    # per-grid-step footprint budget


def _cdiv(a, b):
    return -(-a // b)


# --------------------------------------------------------------------------
# Whole-row kernel: one grid step = Rc channels of one batch, full spatial L.
# --------------------------------------------------------------------------
def _inorm_rows_kernel(x_ref, gb_ref, o_ref, *, ch, rc):
    j = pl.program_id(1)
    x = x_ref[...].astype(jnp.float32)                       # (rc, L)
    inv_n = 1.0 / x.shape[-1]

    # Two-pass statistics (x is resident in VMEM; avoids E[x^2]-mean^2 cancellation).
    mean = jnp.sum(x, axis=-1, keepdims=True) * inv_n         # (rc, 1)
    xc = x - mean
    var = jnp.sum(xc * xc, axis=-1, keepdims=True) * inv_n    # biased, torch semantics
    inv = lax.rsqrt(var + _EPS)

    # Channel mask computed in-kernel (no mask side-input): rows >= ch are identity.
    c_idx = j * rc + lax.broadcasted_iota(jnp.int32, (rc, 1), 0)
    do_norm = c_idx < ch

    g = gb_ref[:, 0:1]                                        # gamma (1.0 padding)
    b = gb_ref[:, 1:2]                                        # beta  (0.0 padding)
    scale = jnp.where(do_norm, inv * g, 1.0)
    shift = jnp.where(do_norm, b - mean * scale, 0.0)
    o_ref[...] = (x * scale + shift).astype(o_ref.dtype)


# --------------------------------------------------------------------------
# Split path, call 1: chunked per-instance sum / sum-of-squares accumulation.
# Spatial axis (last grid axis) is "arbitrary"; stats outputs are grid-resident.
# --------------------------------------------------------------------------
def _stats_kernel(x_ref, s_ref, ss_ref, *, L, ls):
    k = pl.program_id(2)

    @pl.when(k == 0)
    def _():
        s_ref[...] = jnp.zeros_like(s_ref)
        ss_ref[...] = jnp.zeros_like(ss_ref)

    x = x_ref[...].astype(jnp.float32)                        # (rc, ls)
    # Mask the spatial tail (last chunk may extend past L; OOB reads are garbage).
    col = k * ls + lax.broadcasted_iota(jnp.int32, x.shape, 1)
    x = jnp.where(col < L, x, 0.0)
    # TODO(synk): for extremely large L, switch to chunk-merged (Chan/Welford)
    # statistics to further reduce f32 accumulation error.
    s_ref[...] += jnp.sum(x, axis=-1, keepdims=True)
    ss_ref[...] += jnp.sum(x * x, axis=-1, keepdims=True)


# --------------------------------------------------------------------------
# Split path, call 2: normalize each spatial chunk using the finished stats.
# --------------------------------------------------------------------------
def _norm_chunk_kernel(x_ref, s_ref, ss_ref, gb_ref, o_ref, *, ch, rc, L):
    j = pl.program_id(1)
    x = x_ref[...].astype(jnp.float32)                        # (rc, ls)
    inv_n = 1.0 / L
    mean = s_ref[...] * inv_n                                 # (rc, 1)
    var = jnp.maximum(ss_ref[...] * inv_n - mean * mean, 0.0)
    inv = lax.rsqrt(var + _EPS)

    c_idx = j * rc + lax.broadcasted_iota(jnp.int32, (rc, 1), 0)
    do_norm = c_idx < ch
    scale = jnp.where(do_norm, inv * gb_ref[:, 0:1], 1.0)
    shift = jnp.where(do_norm, gb_ref[:, 1:2] - mean * scale, 0.0)
    o_ref[...] = (x * scale + shift).astype(o_ref.dtype)


def _instance_norm_fused(x, gamma, beta, *, max_block_elems=None):
    """InstanceNorm3d(C//2, affine=True) on the first half of the channels,
    passthrough on the second half, written in place (aliased output)."""
    N, C, D, H, W = x.shape
    ch = C // 2
    L = D * H * W
    itemsize = jnp.dtype(x.dtype).itemsize

    # ~ per-element VMEM footprint of one grid step: double-buffered in + out
    # blocks (input dtype) plus f32 upcast / centered / result temps.
    per_elem = 4 * itemsize + 12
    if max_block_elems is None:
        max_block_elems = max(1024, _BLOCK_BUDGET_BYTES // per_elem)

    # ---- channel tiling: second-minor block dim must be a multiple of 8 or
    # the full channel dim.
    if ch >= 8:
        rc_cap = _cdiv(ch, 8) * 8                  # covers all normalized channels
        rc = min(rc_cap, max(8, (max_block_elems // max(L, 1)) // 8 * 8))
        # Megacore (v7x): keep at least 2 grid steps when the channel blocking allows it.
        while N * _cdiv(ch, rc) < 2 and rc > 8:
            rc = max(8, ((rc // 2) // 8) * 8)
    else:
        # Tiny-C fallback: stream all channels; passthrough rows are identity writes.
        rc = C
    n_cblk = _cdiv(ch, rc)
    ch_pad = n_cblk * rc                           # always <= C (blocks stay in bounds)

    xr = x.reshape(N, C, L)                        # free row-major reshape

    # Packed per-channel (gamma, beta), padded with identity for rc-rounding.
    gamma_pad = jnp.ones((ch_pad,), jnp.float32).at[:ch].set(gamma.astype(jnp.float32))
    beta_pad = jnp.zeros((ch_pad,), jnp.float32).at[:ch].set(beta.astype(jnp.float32))
    gb = jnp.stack([gamma_pad, beta_pad], axis=-1)                    # (ch_pad, 2)

    # ---------------------------------------------------------------- whole-row path
    if rc * L <= max_block_elems:
        out = pl.pallas_call(
            functools.partial(_inorm_rows_kernel, ch=ch, rc=rc),
            out_shape=jax.ShapeDtypeStruct((N, C, L), x.dtype),
            grid=(N, n_cblk),
            in_specs=[
                pl.BlockSpec((None, rc, L), lambda n, j: (n, j, 0)),   # x (lane-dense)
                pl.BlockSpec((rc, 2), lambda n, j: (j, 0)),            # packed gamma/beta
            ],
            out_specs=pl.BlockSpec((None, rc, L), lambda n, j: (n, j, 0)),
            input_output_aliases={0: 0},           # in-place: passthrough half untouched
            compiler_params=pltpu.CompilerParams(
                dimension_semantics=("parallel", "parallel"),
                vmem_limit_bytes=_VMEM_LIMIT_BYTES),
        )(xr, gb)
        return out.reshape(N, C, D, H, W)

    # ---------------------------------------------------------------- split path
    # A single instance row does not fit the block budget: chunk the spatial
    # axis (128-aligned), accumulate stats first, then normalize per chunk.
    ls = max(128, (max_block_elems // rc) // 128 * 128)
    ls = min(ls, _cdiv(L, 128) * 128)
    n_sblk = _cdiv(L, ls)

    s_sum, s_sq = pl.pallas_call(
        functools.partial(_stats_kernel, L=L, ls=ls),
        out_shape=(jax.ShapeDtypeStruct((N, ch_pad, 1), jnp.float32),
                   jax.ShapeDtypeStruct((N, ch_pad, 1), jnp.float32)),
        grid=(N, n_cblk, n_sblk),
        in_specs=[pl.BlockSpec((None, rc, ls), lambda n, j, k: (n, j, k))],
        out_specs=(pl.BlockSpec((None, rc, 1), lambda n, j, k: (n, j, 0)),
                   pl.BlockSpec((None, rc, 1), lambda n, j, k: (n, j, 0))),
        compiler_params=pltpu.CompilerParams(
            dimension_semantics=("parallel", "parallel", "arbitrary"),
            vmem_limit_bytes=_VMEM_LIMIT_BYTES),
    )(xr)

    out = pl.pallas_call(
        functools.partial(_norm_chunk_kernel, ch=ch, rc=rc, L=L),
        out_shape=jax.ShapeDtypeStruct((N, C, L), x.dtype),
        grid=(N, n_cblk, n_sblk),
        in_specs=[
            pl.BlockSpec((None, rc, ls), lambda n, j, k: (n, j, k)),   # x chunk
            pl.BlockSpec((None, rc, 1), lambda n, j, k: (n, j, 0)),    # sum
            pl.BlockSpec((None, rc, 1), lambda n, j, k: (n, j, 0)),    # sum of squares
            pl.BlockSpec((rc, 2), lambda n, j, k: (j, 0)),             # gamma/beta
        ],
        out_specs=pl.BlockSpec((None, rc, ls), lambda n, j, k: (n, j, k)),
        input_output_aliases={0: 0},
        compiler_params=pltpu.CompilerParams(
            dimension_semantics=("parallel", "parallel", "parallel"),
            vmem_limit_bytes=_VMEM_LIMIT_BYTES),
    )(xr, s_sum, s_sq, gb)
    return out.reshape(N, C, D, H, W)


def instance_norm3d_forward(x, in_gamma, in_beta, bn_gamma, bn_beta):
    """Forward of the PyTorch InstanceNorm3d wrapper module."""
    N, C, D, H, W = x.shape
    if C == 1:
        # BatchNorm3d path (training-mode batch statistics), plain JAX.
        # TODO(synk): BatchNorm3d running-stat (momentum) updates / eval-mode
        # statistics are not modelled (they do not affect this forward output).
        mean = jnp.mean(x, axis=(0, 2, 3, 4), keepdims=True)
        var = jnp.mean(jnp.square(x - mean), axis=(0, 2, 3, 4), keepdims=True)
        xhat = (x - mean) * lax.rsqrt(var + _EPS)
        return xhat * bn_gamma.reshape(1, C, 1, 1, 1) + bn_beta.reshape(1, C, 1, 1, 1)
    return _instance_norm_fused(x, in_gamma, in_beta)


def _reference(x, in_gamma, in_beta):
    """Pure-JAX reference for the C > 1 branch."""
    N, C, D, H, W = x.shape
    ch = C // 2
    x1, x2 = x[:, :ch], x[:, ch:]
    mean = jnp.mean(x1, axis=(2, 3, 4), keepdims=True)
    var = jnp.mean(jnp.square(x1 - mean), axis=(2, 3, 4), keepdims=True)
    xhat = (x1 - mean) / jnp.sqrt(var + _EPS)
    out1 = xhat * in_gamma.reshape(1, ch, 1, 1, 1) + in_beta.reshape(1, ch, 1, 1, 1)
    return jnp.concatenate([out1, x2], axis=1)


if __name__ == "__main__":
    keys = jax.random.split(jax.random.PRNGKey(0), 8)

    # ---- Test 1: main path (C//2 >= 8): the kernel never touches the passthrough half.
    N, C, D, H, W = 2, 16, 4, 8, 16
    ch = C // 2
    x = jax.random.normal(keys[0], (N, C, D, H, W), jnp.float32) * 2.0 + 0.5
    g = jnp.ones((ch,), jnp.float32) + 0.1 * jax.random.normal(keys[1], (ch,))
    b = 0.1 * jax.random.normal(keys[2], (ch,))
    bn_g, bn_b = jnp.ones((C,), jnp.float32), jnp.zeros((C,), jnp.float32)
    ref = _reference(x, g, b)
    # NOTE: in production, donate x (jax.jit(..., donate_argnums=0)) so the
    # input/output alias updates the tensor in place with no defensive copy.
    out = jax.block_until_ready(jax.jit(instance_norm3d_forward)(x, g, b, bn_g, bn_b))
    np.testing.assert_allclose(np.asarray(out), np.asarray(ref), rtol=1e-5, atol=1e-5)

    # ---- Test 2: tiny-C fallback (C//2 < 8 -> full-channel block + in-kernel mask).
    x2 = jax.random.normal(keys[3], (2, 4, 8, 8, 16), jnp.float32)
    g2 = jnp.ones((2,), jnp.float32) + 0.1 * jax.random.normal(keys[4], (2,))
    b2 = jnp.array([0.3, -0.2], jnp.float32)
    ref2 = _reference(x2, g2, b2)
    out2 = jax.block_until_ready(
        jax.jit(instance_norm3d_forward)(x2, g2, b2, jnp.ones((4,), jnp.float32),
                                         jnp.zeros((4,), jnp.float32)))
    np.testing.assert_allclose(np.asarray(out2), np.asarray(ref2), rtol=1e-5, atol=1e-5)

    # ---- Test 3: spatial-split path (forced tiny block budget; L=960 is not a
    #      multiple of the 256-wide chunks -> exercises the tail mask).
    x3 = jax.random.normal(keys[5], (1, 16, 4, 8, 30), jnp.float32) + 1.5
    g3 = jnp.full((8,), 1.25, jnp.float32)
    b3 = jnp.full((8,), -0.5, jnp.float32)
    ref3 = _reference(x3, g3, b3)
    split_fn = jax.jit(functools.partial(_instance_norm_fused, max_block_elems=2048))
    out3 = jax.block_until_ready(split_fn(x3, g3, b3))
    np.testing.assert_allclose(np.asarray(out3), np.asarray(ref3), rtol=1e-4, atol=1e-4)

    # ---- Test 4: C == 1 -> BatchNorm3d (training-mode batch stats), plain JAX.
    x4 = jax.random.normal(keys[6], (2, 1, 4, 4, 8), jnp.float32)
    out4 = instance_norm3d_forward(x4, jnp.zeros((0,), jnp.float32),
                                   jnp.zeros((0,), jnp.float32),
                                   jnp.array([1.3], jnp.float32),
                                   jnp.array([0.2], jnp.float32))
    m4 = jnp.mean(x4)
    v4 = jnp.mean(jnp.square(x4 - m4))
    ref4 = (x4 - m4) * lax.rsqrt(v4 + _EPS) * 1.3 + 0.2
    out4 = jax.block_until_ready(out4)
    np.testing.assert_allclose(np.asarray(out4), np.asarray(ref4), rtol=1e-5, atol=1e-5)

    print("KERNEL_OK")
</pallas_src>

<mosaic_0001>
module attributes {stable_mosaic.version = 11 : i64} {
  func.func @_inorm_rows_kernel(%arg0: i32, %arg1: i32, %arg2: memref<1x8x512xf32, #tpu.memory_space<vmem>>, %arg3: memref<8x2xf32, #tpu.memory_space<vmem>>, %arg4: memref<1x8x512xf32, #tpu.memory_space<vmem>>) attributes {dimension_semantics = [#tpu.dimension_semantics<parallel>, #tpu.dimension_semantics<parallel>], iteration_bounds = array<i64: 2, 1>, scalar_prefetch = 0 : i64, scratch_operands = 0 : i64, tpu.core_type = #tpu.core_type<tc>, window_params = [{transform_indices = @transform_0, window_bounds = array<i64: 1, 8, 512>}, {transform_indices = @transform_1, window_bounds = array<i64: 8, 2>}, {transform_indices = @transform_2, window_bounds = array<i64: 1, 8, 512>}]} {
    %c0 = arith.constant 0 : index
    %c0_0 = arith.constant 0 : index
    %c0_1 = arith.constant 0 : index
    %0 = vector.load %arg2[%c0, %c0_0, %c0_1] : memref<1x8x512xf32, #tpu.memory_space<vmem>>, vector<1x8x512xf32>
    %1 = vector.shape_cast %0 : vector<1x8x512xf32> to vector<8x512xf32>
    %cst = arith.constant dense<0.000000e+00> : vector<8xf32>
    %2 = vector.multi_reduction <add>, %1, %cst [1] : vector<8x512xf32> to vector<8xf32>
    %3 = vector.shape_cast %2 : vector<8xf32> to vector<8x1xf32>
    %cst_2 = arith.constant 0.001953125 : f32
    %4 = vector.broadcast %cst_2 : f32 to vector<8x1xf32>
    %5 = arith.mulf %3, %4 : vector<8x1xf32>
    %6 = vector.broadcast %5 : vector<8x1xf32> to vector<8x512xf32>
    %7 = arith.subf %1, %6 : vector<8x512xf32>
    %8 = arith.mulf %7, %7 : vector<8x512xf32>
    %cst_3 = arith.constant dense<0.000000e+00> : vector<8xf32>
    %9 = vector.multi_reduction <add>, %8, %cst_3 [1] : vector<8x512xf32> to vector<8xf32>
    %10 = vector.shape_cast %9 : vector<8xf32> to vector<8x1xf32>
    %cst_4 = arith.constant 0.001953125 : f32
    %11 = vector.broadcast %cst_4 : f32 to vector<8x1xf32>
    %12 = arith.mulf %10, %11 : vector<8x1xf32>
    %cst_5 = arith.constant 9.99999974E-6 : f32
    %13 = vector.broadcast %cst_5 : f32 to vector<8x1xf32>
    %14 = arith.addf %12, %13 : vector<8x1xf32>
    %15 = math.rsqrt %14 : vector<8x1xf32>
    %c8_i32 = arith.constant 8 : i32
    %16 = arith.muli %arg1, %c8_i32 : i32
    %17 = tpu.iota {dimensions = array<i32: 0>} : vector<8x1xi32>
    %18 = vector.broadcast %16 : i32 to vector<8x1xi32>
    %19 = arith.addi %18, %17 : vector<8x1xi32>
    %c8_i32_6 = arith.constant 8 : i32
    %20 = vector.broadcast %c8_i32_6 : i32 to vector<8x1xi32>
    %21 = arith.cmpi slt, %19, %20 : vector<8x1xi32>
    %c0_7 = arith.constant 0 : index
    %c0_8 = arith.constant 0 : index
    %22 = vector.load %arg3[%c0_7, %c0_8] : memref<8x2xf32, #tpu.memory_space<vmem>>, vector<8x1xf32>
    %c0_9 = arith.constant 0 : index
    %c1 = arith.constant 1 : index
    %23 = vector.load %arg3[%c0_9, %c1] : memref<8x2xf32, #tpu.memory_space<vmem>>, vector<8x1xf32>
    %24 = arith.mulf %15, %22 : vector<8x1xf32>
    %cst_10 = arith.constant 1.000000e+00 : f32
    %25 = vector.broadcast %cst_10 : f32 to vector<8x1xf32>
    %26 = arith.select %21, %24, %25 : vector<8x1xi1>, vector<8x1xf32>
    %27 = arith.mulf %5, %26 : vector<8x1xf32>
    %28 = arith.subf %23, %27 : vector<8x1xf32>
    %cst_11 = arith.constant 0.000000e+00 : f32
    %29 = vector.broadcast %cst_11 : f32 to vector<8x1xf32>
    %30 = arith.select %21, %28, %29 : vector<8x1xi1>, vector<8x1xf32>
    %31 = vector.broadcast %26 : vector<8x1xf32> to vector<8x512xf32>
    %32 = arith.mulf %1, %31 : vector<8x512xf32>
    %33 = vector.broadcast %30 : vector<8x1xf32> to vector<8x512xf32>
    %34 = arith.addf %32, %33 : vector<8x512xf32>
    %c0_12 = arith.constant 0 : index
    %c0_13 = arith.constant 0 : index
    %c0_14 = arith.constant 0 : index
    %35 = vector.load %arg4[%c0_12, %c0_13, %c0_14] : memref<1x8x512xf32, #tpu.memory_space<vmem>>, vector<1x8x512xf32>
    %36 = vector.shape_cast %35 : vector<1x8x512xf32> to vector<8x512xf32>
    %37 = vector.shape_cast %34 : vector<8x512xf32> to vector<1x8x512xf32>
    tpu.vector_store %arg4[%c0_12, %c0_13, %c0_14], %37 {strides = array<i32>} : memref<1x8x512xf32, #tpu.memory_space<vmem>>, vector<1x8x512xf32>,
    return
  }
  func.func @transform_0(%arg0: i32, %arg1: i32) -> (i32, i32, i32) {
    %c0_i32 = arith.constant 0 : i32
    %c0_i32_0 = arith.constant 0 : i32
    return %arg0, %arg1, %c0_i32 : i32, i32, i32
  }
  func.func @transform_1(%arg0: i32, %arg1: i32) -> (i32, i32) {
    %c0_i32 = arith.constant 0 : i32
    %c0_i32_0 = arith.constant 0 : i32
    return %arg1, %c0_i32 : i32, i32
  }
  func.func @transform_2(%arg0: i32, %arg1: i32) -> (i32, i32, i32) {
    %c0_i32 = arith.constant 0 : i32
    %c0_i32_0 = arith.constant 0 : i32
    return %arg0, %arg1, %c0_i32 : i32, i32, i32
  }
}

</mosaic_0001>

<bundles_post_ra>
// kernel: instance_norm3d_forward.1
= control target key start
LH: loop header
LB: loop body
LE: loop exit
PB: predicated region body
PF: predicated region fallthrough
CT: control target
= control target key end

     0   :  { %s456_s9 = smov 0   ;;  %s458_s10 = smov 0   ;;  %s499_s0 = inlined_call_operand.vmem [shape: f32[2,16,512], index: 0, kind: input, shape index: {}, may-alias: {0,2}]   ;;  %s500_s1 = inlined_call_operand.vmem [shape: f32[8,2], index: 1, kind: input, shape index: {}]   ;;  %s501_s2 = inlined_call_operand.vmem [shape: f32[2,16,512], index: 2, kind: output, shape index: {}, may-alias: {0,2}]  }
   0x1   :  { %s460_s11 = smov 0  }
   0x2 LB: > { %s24_s12 = sadd.s32 1, %s432_s10  ;;  %p374_p0 = scmp.ge.s32.totalorder %s436_s11, 1  ;;  %s436_s11 = sphi %s460_s11, %s12_s11   ;;  %s432_s10 = sphi %s458_s10, %s503_s10   ;;  %s428_s9 = sphi %s456_s9, %s502_s9  }
   0x3   : > { %p26_p1 = scmp.ge.s32.totalorder %s24_s12, 2  ;;  %p141_p2 = scmp.lt.s32.totalorder %s436_s11, 3 }
   0x5   : > { %s505_s12 = smov (%p26_p1, %s24_s12), 0  ;;  %p142_p3 = pnand %p374_p0, %p141_p2 }
   0x6   : > { %p175_p4 = scmp.lt.s32.totalorder (!%p142_p3), %s428_s9, 1  ;;  %v438_v20 = vmov (!%p142_p3), 0   ;;  %v439_v24 = vmov (!%p142_p3), 1   ;;  %v229_v25 = vld [vmem:[%s500_s1] sm:$0xff] (!%p142_p3)  ;;  %s440_s19 = smov (!%p142_p3), 1  }
   0x7   : > { %145 = sbr.rel (%p142_p3) target bundleno = 588 (0x24c), region = 28  ;;  %410 = vset.pattern.permute.xlu1 (!%p142_p3), %v438_v20  ;;  %411 = vset.pattern.permute.xlu0 (!%p142_p3), %v439_v24 }
   0xe   : > { %s507_s9 = smov (!%p175_p4, %s428_s9), 1 }
   0xf   : > { %s381_s13 = sshll.u32 %s507_s9, 6 }
  0x10   : > { %s183_s16 = scalar_lea.vmem %s499_s0, %s381_s13  ;;  %s196_s22 = scalar_lea.vmem %s501_s2, %s381_s13 }
  0x11   : > { %v197_v0 = vld [vmem:[%s183_s16] sm:$0xff]  ;;  %v198_v1 = vld [vmem:[%s183_s16 + $0x8] sm:$0xff]  ;;  %v199_v2 = vld [vmem:[%s183_s16 + $0x10] sm:$0xff] }
  0x12   : > { %v201_v3 = vadd.f32 %v198_v1, %v197_v0  ;;  %v200_v4 = vld [vmem:[%s183_s16 + $0x18] sm:$0xff] }
  0x14   : > { %v202_v5 = vadd.f32 %v201_v3, %v199_v2 }
  0x16   : > { %v203_v6 = vadd.f32 %v202_v5, %v200_v4 }
  0x18   : > { %204 = vadd.xlane.f32.xlu0 %v203_v6 }
  0xa5   : > { %v205_v7 = vpop.xlane.xlu0 %204 }
  0xa6   : > { %v206_v8 = vmul.f32 0.001953125, %v205_v7 }
  0xa8   : > { %v207_v9 = vsub.f32 %v197_v0, %v206_v8  ;;  %v208_v10 = vsub.f32 %v198_v1, %v206_v8  ;;  %v209_v11 = vsub.f32 %v199_v2, %v206_v8  ;;  %v210_v12 = vsub.f32 %v200_v4, %v206_v8 }
  0xaa   : > { %v211_v13 = vmul.f32 %v207_v9, %v207_v9  ;;  %v212_v14 = vmul.f32 %v208_v10, %v208_v10  ;;  %v213_v15 = vmul.f32 %v209_v11, %v209_v11  ;;  %v214_v17 = vmul.f32 %v210_v12, %v210_v12 }
  0xac   : > { %v215_v16 = vadd.f32 %v212_v14, %v211_v13 }
  0xae   : > { %v216_v18 = vadd.f32 %v215_v16, %v213_v15 }
  0xb0   : > { %v217_v19 = vadd.f32 %v216_v18, %v214_v17 }
  0xb2   : > { %218 = vadd.xlane.f32.xlu0 %v217_v19 }
 0x13f   : > { %v219_v21 = vpop.xlane.xlu0 %218 }
 0x140   : > { %v220_v22 = vmul.f32 0.001953125, %v219_v21 }
 0x142   : > { %v221_v23 = vadd.f32 1e-05, %v220_v22 }
 0x144   : > { %412 = vrsqrt.f32 %v221_v23 }
 0x14e   : > { %v413_v26 = vpop.eup %412 }
 0x14f   : > { %v230_v27 = vmul.f32 %v413_v26, %v229_v25 }
 0x151   : > { %v232_v28 = vmul.f32 %v230_v27, %v206_v8 }
 0x153   : > { %234 = vrot.lane.b32.xlu1 %v232_v28, %s440_s19 }
 0x157   : > { %241 = vperm.xlu1 %410, %v230_v27  }
 0x1c5   : > { %v235_v29 = vpop.permute.xlu1 %234 }
 0x1c6   : > { %v237_v30 = vsub.f32 %v229_v25, %v235_v29 }
 0x1c8   : > { %250 = vperm.xlu0 %411, %v237_v30  }
 0x1d6   : > { %v242_v31 = vpop.permute.xlu1 %241 }
 0x1d7   : > { %v244_v32 = vmul.f32 %v242_v31, %v197_v0  ;;  %v245_v33 = vmul.f32 %v242_v31, %v198_v1  ;;  %v246_v34 = vmul.f32 %v242_v31, %v199_v2  ;;  %v247_v35 = vmul.f32 %v242_v31, %v200_v4 }
 0x247   : > { %v251_v36 = vpop.permute.xlu0 %250 }
 0x248   : > { %v253_v37 = vadd.f32 %v251_v36, %v244_v32  ;;  %v254_v38 = vadd.f32 %v251_v36, %v245_v33  ;;  %v255_v39 = vadd.f32 %v251_v36, %v246_v34  ;;  %v256_v40 = vadd.f32 %v251_v36, %v247_v35 }
 0x24a   : > { %257 = vst [vmem:[%s196_s22] sm:$0xff] %v253_v37  ;;  %258 = vst [vmem:[%s196_s22 + $0x8] sm:$0xff] %v254_v38 }
 0x24b   : > { %259 = vst [vmem:[%s196_s22 + $0x10] sm:$0xff] %v255_v39  ;;  %260 = vst [vmem:[%s196_s22 + $0x18] sm:$0xff] %v256_v40 }
 0x24c PF: > { %s12_s11 = sadd.s32 1, %s436_s11   ;;  %s502_s9 = smov %s432_s10 }
 0x24d   : > { %p9_p5 = scmp.ge.s32.totalorder %s12_s11, 4   ;;  %s503_s10 = smov %s505_s12 }
 0x24f   :  { %11 = sbr.rel (!%p9_p5) target bundleno = 2 (0x2), region = 61 }

</bundles_post_ra>
